<compile_context>
chip_gen: v7x
topology: tpu7x:2x2x1
jax: 0.10.0
libtpu: 0.0.40
codegen_flags: <defaults>
</compile_context>

<pallas_src>
import functools

import jax
import jax.numpy as jnp
from jax.experimental import pallas as pl
from jax.experimental.pallas import tpu as pltpu

_LANE = 128
_MAX_ROW_TILE = 4096       # 4096 x 128 f32 = 2 MiB per input block
_NCORES_FALLBACK = 2       # assume 2 TCs (v7x) when the hardware query fails


def _round_up(n, m):
    return ((n + m - 1) // m) * m


def _sublane_multiple(dtype):
    # f32 -> 8 rows, bf16 -> 16, int8/fp8 -> 32 (sub-32-bit packs along sublanes).
    return max(8, 32 // max(1, jnp.dtype(dtype).itemsize))


def _num_tensorcores():
    try:
        info = pltpu.get_tpu_info()
        for name in ("num_cores", "num_tensorcores", "tensorcore_count",
                     "core_count"):
            v = getattr(info, name, None)
            if isinstance(v, int) and v > 0:
                return max(1, min(v, 4))
    except Exception:
        pass
    return _NCORES_FALLBACK


def _partial_sums(x, t, valid=None):
    """Per-(sublane, lane) partial sums of the four reduction streams."""
    e = jnp.exp(-jnp.abs(x))                              # one exp per element
    bce = jnp.maximum(x, 0.0) - x * t + jnp.log1p(e)      # stable BCE-with-logits
    r = pl.reciprocal(1.0 + e, approx=True)               # EUP, not VALU divide
    sig = jnp.where(x >= 0.0, r, e * r)                   # sigmoid(x)
    streams = (bce, sig * t, sig, t)
    if valid is not None:
        zero = jnp.zeros_like(x)
        streams = tuple(jnp.where(valid, s, zero) for s in streams)
    rows = x.shape[0]
    # (rows, 128) -> (rows//8, 8, 128) is a free relayout (vreg-granular), and
    # the axis-0 sum is plain full-vreg adds -> (8, 128) partials.
    return [jnp.sum(s.reshape(rows // 8, 8, _LANE), axis=0) for s in streams]


def _bce_dice_kernel(x_ref, t_ref, sums_ref, *, tiles_per_core, tile_rows,
                     n_rows):
    c = pl.program_id(0)   # core-parallel axis
    i = pl.program_id(1)   # reduction axis

    @pl.when(i == 0)
    def _init():
        sums_ref[...] = jnp.zeros_like(sums_ref)

    x = x_ref[...].astype(jnp.float32)
    t = t_ref[...].astype(jnp.float32)

    tile_idx = c * tiles_per_core + i                 # unclamped logical tile
    is_full = (tile_idx + 1) * tile_rows <= n_rows    # interior (fully valid)?

    def _accumulate(psums):
        # Unmasked full-vreg read-modify-writes into the resident output block.
        for s in range(4):
            sums_ref[s, :, :] += psums[s]

    @pl.when(is_full)
    def _interior():                                  # mask-free fast path
        _accumulate(_partial_sums(x, t))
        # TODO(synk): on v7x only, the four column reductions could be offloaded
        # to the idle MXU (ones @ stream) for another ~10-15%.

    @pl.when(jnp.logical_not(is_full))
    def _edge():
        # Last real tile (partial rows) or clamped phantom tile (no valid rows).
        row_limit = n_rows - tile_idx * tile_rows     # <= 0 for phantom tiles
        row = jax.lax.broadcasted_iota(jnp.int32, x.shape, 0)
        _accumulate(_partial_sums(x, t, valid=row < row_limit))


def bce_dice_loss(inputs, targets, smooth=1.0):
    """Exact forward of BCEDiceLoss: BCEWithLogits(mean) + (1 - soft dice)."""
    assert inputs.shape == targets.shape
    n = int(inputs.size)
    x = inputs.reshape(-1)   # native dtype end-to-end; cast happens in-kernel
    t = targets.reshape(-1)

    n_main = (n // _LANE) * _LANE
    rows = n_main // _LANE

    if n_main < n:
        # Ragged (<128 element) tail: tiny plain-jnp slice instead of
        # materializing padded copies of both full arrays.
        xt = x[n_main:].astype(jnp.float32)
        tt = t[n_main:].astype(jnp.float32)
        et = jnp.exp(-jnp.abs(xt))
        st = jnp.where(xt >= 0.0, 1.0 / (1.0 + et), et / (1.0 + et))
        tail = jnp.stack([
            jnp.sum(jnp.maximum(xt, 0.0) - xt * tt + jnp.log1p(et)),
            jnp.sum(st * tt), jnp.sum(st), jnp.sum(tt)])
        x, t = x[:n_main], t[:n_main]
    else:
        tail = jnp.zeros((4,), jnp.float32)

    if rows == 0:
        totals = tail
    else:
        x2 = x.reshape(rows, _LANE)
        t2 = t.reshape(rows, _LANE)

        sub = max(_sublane_multiple(x2.dtype), _sublane_multiple(t2.dtype))
        tile_rows = min(_MAX_ROW_TILE, _round_up(rows, sub))
        tiles_total = pl.cdiv(rows, tile_rows)
        ncores = max(1, min(_num_tensorcores(), tiles_total))
        tiles_per_core = pl.cdiv(tiles_total, ncores)

        def in_map(c, i):
            # Clamp so a phantom tile past the end never issues a fully-OOB DMA;
            # its contribution is zeroed in-kernel by the row mask.
            return (jnp.minimum(c * tiles_per_core + i, tiles_total - 1), 0)

        kernel = functools.partial(
            _bce_dice_kernel,
            tiles_per_core=tiles_per_core,
            tile_rows=tile_rows,
            n_rows=rows,
        )

        # TODO(synk): on v7x, confirm via xprof that grid axis 0 shards across
        # both TensorCores; if it serializes, switch it to pltpu.CORE_PARALLEL.
        sums = pl.pallas_call(
            kernel,
            out_shape=jax.ShapeDtypeStruct((ncores, 4, 8, _LANE), jnp.float32),
            grid_spec=pltpu.PrefetchScalarGridSpec(
                num_scalar_prefetch=0,
                grid=(ncores, tiles_per_core),
                in_specs=[
                    pl.BlockSpec((tile_rows, _LANE), in_map),
                    pl.BlockSpec((tile_rows, _LANE), in_map),
                ],
                out_specs=pl.BlockSpec((None, 4, 8, _LANE),
                                       lambda c, i: (c, 0, 0, 0)),
            ),
            compiler_params=pltpu.CompilerParams(
                dimension_semantics=("parallel", "arbitrary"),
            ),
        )(x2, t2)

        # Tiny (ncores, 4, 8, 128) cross-core/sublane/lane reduction.
        totals = jnp.sum(sums, axis=(0, 2, 3)) + tail

    bce_mean = totals[0] / n
    dice_loss = 1.0 - (2.0 * totals[1] + smooth) / (totals[2] + totals[3] + smooth)
    return dice_loss + bce_mean


if __name__ == "__main__":
    key = jax.random.PRNGKey(0)
    k1, k2 = jax.random.split(key)

    # NCHW, like the PyTorch module would receive from a segmentation head.
    x = jax.random.normal(k1, (2, 4, 16, 16), dtype=jnp.float32)   # logits
    t = jax.random.bernoulli(k2, 0.5, (2, 4, 16, 16)).astype(jnp.float32)

    loss = jax.block_until_ready(bce_dice_loss(x, t))

    # Pure-JAX reference (same math).  Tolerance covers the EUP approximate
    # reciprocal (~2^-12 relative) used for the in-kernel sigmoid.
    bce_ref = jnp.mean(jnp.maximum(x, 0.0) - x * t + jnp.log1p(jnp.exp(-jnp.abs(x))))
    s = jax.nn.sigmoid(x)
    inter = jnp.sum(s * t)
    union = jnp.sum(s) + jnp.sum(t)
    ref = (1.0 - (2.0 * inter + 1.0) / (union + 1.0)) + bce_ref
    assert jnp.allclose(loss, ref, rtol=5e-4, atol=5e-4), (loss, ref)

    print("KERNEL_OK")
</pallas_src>

<mosaic_0001>
module attributes {stable_mosaic.version = 11 : i64} {
  func.func @_bce_dice_kernel(%arg0: i32, %arg1: i32, %arg2: memref<16x128xf32, #tpu.memory_space<vmem>>, %arg3: memref<16x128xf32, #tpu.memory_space<vmem>>, %arg4: memref<1x4x8x128xf32, #tpu.memory_space<vmem>>) attributes {dimension_semantics = [#tpu.dimension_semantics<parallel>, #tpu.dimension_semantics<arbitrary>], iteration_bounds = array<i64: 1, 1>, scalar_prefetch = 0 : i64, scratch_operands = 0 : i64, tpu.core_type = #tpu.core_type<tc>, window_params = [{transform_indices = @transform_0, window_bounds = array<i64: 16, 128>}, {transform_indices = @transform_1, window_bounds = array<i64: 16, 128>}, {transform_indices = @transform_2, window_bounds = array<i64: 1, 4, 8, 128>}]} {
    %c0_i32 = arith.constant 0 : i32
    %0 = arith.cmpi eq, %arg1, %c0_i32 : i32
    %1 = arith.extui %0 : i1 to i32
    %c0_i32_0 = arith.constant 0 : i32
    %2 = arith.cmpi ne, %1, %c0_i32_0 : i32
    scf.if %2 {
      %cst = arith.constant 0.000000e+00 : f32
      %15 = vector.broadcast %cst : f32 to vector<4x8x128xf32>
      %c0_8 = arith.constant 0 : index
      %c0_9 = arith.constant 0 : index
      %c0_10 = arith.constant 0 : index
      %c0_11 = arith.constant 0 : index
      %16 = vector.load %arg4[%c0_8, %c0_9, %c0_10, %c0_11] : memref<1x4x8x128xf32, #tpu.memory_space<vmem>>, vector<1x4x8x128xf32>
      %17 = vector.shape_cast %16 : vector<1x4x8x128xf32> to vector<4x8x128xf32>
      %18 = vector.shape_cast %15 : vector<4x8x128xf32> to vector<1x4x8x128xf32>
      tpu.vector_store %arg4[%c0_8, %c0_9, %c0_10, %c0_11], %18 {strides = array<i32>} : memref<1x4x8x128xf32, #tpu.memory_space<vmem>>, vector<1x4x8x128xf32>,
    } else {
    }
    %c0 = arith.constant 0 : index
    %c0_1 = arith.constant 0 : index
    %3 = vector.load %arg2[%c0, %c0_1] : memref<16x128xf32, #tpu.memory_space<vmem>>, vector<16x128xf32>
    %c0_2 = arith.constant 0 : index
    %c0_3 = arith.constant 0 : index
    %4 = vector.load %arg3[%c0_2, %c0_3] : memref<16x128xf32, #tpu.memory_space<vmem>>, vector<16x128xf32>
    %c1_i32 = arith.constant 1 : i32
    %5 = arith.muli %arg0, %c1_i32 : i32
    %6 = arith.addi %5, %arg1 : i32
    %c1_i32_4 = arith.constant 1 : i32
    %7 = arith.addi %6, %c1_i32_4 : i32
    %c16_i32 = arith.constant 16 : i32
    %8 = arith.muli %7, %c16_i32 : i32
    %c16_i32_5 = arith.constant 16 : i32
    %9 = arith.cmpi sle, %8, %c16_i32_5 : i32
    %10 = arith.extui %9 : i1 to i32
    %c0_i32_6 = arith.constant 0 : i32
    %11 = arith.cmpi ne, %10, %c0_i32_6 : i32
    scf.if %11 {
      %15 = math.absf %3 : vector<16x128xf32>
      %cst = arith.constant 0.000000e+00 : f32
      %16 = vector.broadcast %cst : f32 to vector<16x128xf32>
      %17 = arith.subf %16, %15 : vector<16x128xf32>
      %18 = math.exp %17 : vector<16x128xf32>
      %cst_8 = arith.constant 0.000000e+00 : f32
      %19 = vector.broadcast %cst_8 : f32 to vector<16x128xf32>
      %20 = arith.maximumf %3, %19 : vector<16x128xf32>
      %21 = arith.mulf %3, %4 : vector<16x128xf32>
      %22 = arith.subf %20, %21 : vector<16x128xf32>
      %23 = math.log1p %18 : vector<16x128xf32>
      %24 = arith.addf %22, %23 : vector<16x128xf32>
      %cst_9 = arith.constant 1.000000e+00 : f32
      %25 = vector.broadcast %cst_9 : f32 to vector<16x128xf32>
      %26 = arith.addf %25, %18 : vector<16x128xf32>
      %27 = tpu.reciprocal %26 {approx = true} : vector<16x128xf32> -> vector<16x128xf32>
      %cst_10 = arith.constant 0.000000e+00 : f32
      %28 = vector.broadcast %cst_10 : f32 to vector<16x128xf32>
      %29 = arith.cmpf oge, %3, %28 : vector<16x128xf32>
      %30 = arith.mulf %18, %27 : vector<16x128xf32>
      %31 = arith.select %29, %27, %30 : vector<16x128xi1>, vector<16x128xf32>
      %32 = arith.mulf %31, %4 : vector<16x128xf32>
      %33 = vector.shape_cast %24 : vector<16x128xf32> to vector<2x8x128xf32>
      %cst_11 = arith.constant dense<0.000000e+00> : vector<8x128xf32>
      %34 = vector.multi_reduction <add>, %33, %cst_11 [0] : vector<2x8x128xf32> to vector<8x128xf32>
      %35 = vector.shape_cast %32 : vector<16x128xf32> to vector<2x8x128xf32>
      %cst_12 = arith.constant dense<0.000000e+00> : vector<8x128xf32>
      %36 = vector.multi_reduction <add>, %35, %cst_12 [0] : vector<2x8x128xf32> to vector<8x128xf32>
      %37 = vector.shape_cast %31 : vector<16x128xf32> to vector<2x8x128xf32>
      %cst_13 = arith.constant dense<0.000000e+00> : vector<8x128xf32>
      %38 = vector.multi_reduction <add>, %37, %cst_13 [0] : vector<2x8x128xf32> to vector<8x128xf32>
      %39 = vector.shape_cast %4 : vector<16x128xf32> to vector<2x8x128xf32>
      %cst_14 = arith.constant dense<0.000000e+00> : vector<8x128xf32>
      %40 = vector.multi_reduction <add>, %39, %cst_14 [0] : vector<2x8x128xf32> to vector<8x128xf32>
      %c0_15 = arith.constant 0 : index
      %c0_16 = arith.constant 0 : index
      %c0_17 = arith.constant 0 : index
      %c0_18 = arith.constant 0 : index
      %41 = vector.load %arg4[%c0_15, %c0_16, %c0_17, %c0_18] : memref<1x4x8x128xf32, #tpu.memory_space<vmem>>, vector<1x1x8x128xf32>
      %42 = vector.shape_cast %41 : vector<1x1x8x128xf32> to vector<8x128xf32>
      %43 = arith.addf %42, %34 : vector<8x128xf32>
      %c0_19 = arith.constant 0 : index
      %c0_20 = arith.constant 0 : index
      %c0_21 = arith.constant 0 : index
      %c0_22 = arith.constant 0 : index
      %44 = vector.load %arg4[%c0_19, %c0_20, %c0_21, %c0_22] : memref<1x4x8x128xf32, #tpu.memory_space<vmem>>, vector<1x1x8x128xf32>
      %45 = vector.shape_cast %44 : vector<1x1x8x128xf32> to vector<8x128xf32>
      %46 = vector.shape_cast %43 : vector<8x128xf32> to vector<1x1x8x128xf32>
      tpu.vector_store %arg4[%c0_19, %c0_20, %c0_21, %c0_22], %46 {strides = array<i32>} : memref<1x4x8x128xf32, #tpu.memory_space<vmem>>, vector<1x1x8x128xf32>,
      %c0_23 = arith.constant 0 : index
      %c1 = arith.constant 1 : index
      %c0_24 = arith.constant 0 : index
      %c0_25 = arith.constant 0 : index
      %47 = vector.load %arg4[%c0_23, %c1, %c0_24, %c0_25] : memref<1x4x8x128xf32, #tpu.memory_space<vmem>>, vector<1x1x8x128xf32>
      %48 = vector.shape_cast %47 : vector<1x1x8x128xf32> to vector<8x128xf32>
      %49 = arith.addf %48, %36 : vector<8x128xf32>
      %c0_26 = arith.constant 0 : index
      %c1_27 = arith.constant 1 : index
      %c0_28 = arith.constant 0 : index
      %c0_29 = arith.constant 0 : index
      %50 = vector.load %arg4[%c0_26, %c1_27, %c0_28, %c0_29] : memref<1x4x8x128xf32, #tpu.memory_space<vmem>>, vector<1x1x8x128xf32>
      %51 = vector.shape_cast %50 : vector<1x1x8x128xf32> to vector<8x128xf32>
      %52 = vector.shape_cast %49 : vector<8x128xf32> to vector<1x1x8x128xf32>
      tpu.vector_store %arg4[%c0_26, %c1_27, %c0_28, %c0_29], %52 {strides = array<i32>} : memref<1x4x8x128xf32, #tpu.memory_space<vmem>>, vector<1x1x8x128xf32>,
      %c0_30 = arith.constant 0 : index
      %c2 = arith.constant 2 : index
      %c0_31 = arith.constant 0 : index
      %c0_32 = arith.constant 0 : index
      %53 = vector.load %arg4[%c0_30, %c2, %c0_31, %c0_32] : memref<1x4x8x128xf32, #tpu.memory_space<vmem>>, vector<1x1x8x128xf32>
      %54 = vector.shape_cast %53 : vector<1x1x8x128xf32> to vector<8x128xf32>
      %55 = arith.addf %54, %38 : vector<8x128xf32>
      %c0_33 = arith.constant 0 : index
      %c2_34 = arith.constant 2 : index
      %c0_35 = arith.constant 0 : index
      %c0_36 = arith.constant 0 : index
      %56 = vector.load %arg4[%c0_33, %c2_34, %c0_35, %c0_36] : memref<1x4x8x128xf32, #tpu.memory_space<vmem>>, vector<1x1x8x128xf32>
      %57 = vector.shape_cast %56 : vector<1x1x8x128xf32> to vector<8x128xf32>
      %58 = vector.shape_cast %55 : vector<8x128xf32> to vector<1x1x8x128xf32>
      tpu.vector_store %arg4[%c0_33, %c2_34, %c0_35, %c0_36], %58 {strides = array<i32>} : memref<1x4x8x128xf32, #tpu.memory_space<vmem>>, vector<1x1x8x128xf32>,
      %c0_37 = arith.constant 0 : index
      %c3 = arith.constant 3 : index
      %c0_38 = arith.constant 0 : index
      %c0_39 = arith.constant 0 : index
      %59 = vector.load %arg4[%c0_37, %c3, %c0_38, %c0_39] : memref<1x4x8x128xf32, #tpu.memory_space<vmem>>, vector<1x1x8x128xf32>
      %60 = vector.shape_cast %59 : vector<1x1x8x128xf32> to vector<8x128xf32>
      %61 = arith.addf %60, %40 : vector<8x128xf32>
      %c0_40 = arith.constant 0 : index
      %c3_41 = arith.constant 3 : index
      %c0_42 = arith.constant 0 : index
      %c0_43 = arith.constant 0 : index
      %62 = vector.load %arg4[%c0_40, %c3_41, %c0_42, %c0_43] : memref<1x4x8x128xf32, #tpu.memory_space<vmem>>, vector<1x1x8x128xf32>
      %63 = vector.shape_cast %62 : vector<1x1x8x128xf32> to vector<8x128xf32>
      %64 = vector.shape_cast %61 : vector<8x128xf32> to vector<1x1x8x128xf32>
      tpu.vector_store %arg4[%c0_40, %c3_41, %c0_42, %c0_43], %64 {strides = array<i32>} : memref<1x4x8x128xf32, #tpu.memory_space<vmem>>, vector<1x1x8x128xf32>,
    } else {
    }
    %true = arith.constant true
    %12 = arith.xori %9, %true : i1
    %13 = arith.extui %12 : i1 to i32
    %c0_i32_7 = arith.constant 0 : i32
    %14 = arith.cmpi ne, %13, %c0_i32_7 : i32
    scf.if %14 {
      %c16_i32_8 = arith.constant 16 : i32
      %15 = arith.muli %6, %c16_i32_8 : i32
      %c16_i32_9 = arith.constant 16 : i32
      %16 = arith.subi %c16_i32_9, %15 : i32
      %17 = tpu.iota {dimensions = array<i32: 0>} : vector<16x128xi32>
      %18 = vector.broadcast %16 : i32 to vector<16x128xi32>
      %19 = arith.cmpi slt, %17, %18 : vector<16x128xi32>
      %20 = math.absf %3 : vector<16x128xf32>
      %cst = arith.constant 0.000000e+00 : f32
      %21 = vector.broadcast %cst : f32 to vector<16x128xf32>
      %22 = arith.subf %21, %20 : vector<16x128xf32>
      %23 = math.exp %22 : vector<16x128xf32>
      %cst_10 = arith.constant 0.000000e+00 : f32
      %24 = vector.broadcast %cst_10 : f32 to vector<16x128xf32>
      %25 = arith.maximumf %3, %24 : vector<16x128xf32>
      %26 = arith.mulf %3, %4 : vector<16x128xf32>
      %27 = arith.subf %25, %26 : vector<16x128xf32>
      %28 = math.log1p %23 : vector<16x128xf32>
      %29 = arith.addf %27, %28 : vector<16x128xf32>
      %cst_11 = arith.constant 1.000000e+00 : f32
      %30 = vector.broadcast %cst_11 : f32 to vector<16x128xf32>
      %31 = arith.addf %30, %23 : vector<16x128xf32>
      %32 = tpu.reciprocal %31 {approx = true} : vector<16x128xf32> -> vector<16x128xf32>
      %cst_12 = arith.constant 0.000000e+00 : f32
      %33 = vector.broadcast %cst_12 : f32 to vector<16x128xf32>
      %34 = arith.cmpf oge, %3, %33 : vector<16x128xf32>
      %35 = arith.mulf %23, %32 : vector<16x128xf32>
      %36 = arith.select %34, %32, %35 : vector<16x128xi1>, vector<16x128xf32>
      %37 = arith.mulf %36, %4 : vector<16x128xf32>
      %cst_13 = arith.constant 0.000000e+00 : f32
      %38 = vector.broadcast %cst_13 : f32 to vector<16x128xf32>
      %39 = arith.select %19, %29, %38 : vector<16x128xi1>, vector<16x128xf32>
      %40 = arith.select %19, %37, %38 : vector<16x128xi1>, vector<16x128xf32>
      %41 = arith.select %19, %36, %38 : vector<16x128xi1>, vector<16x128xf32>
      %42 = arith.select %19, %4, %38 : vector<16x128xi1>, vector<16x128xf32>
      %43 = vector.shape_cast %39 : vector<16x128xf32> to vector<2x8x128xf32>
      %cst_14 = arith.constant dense<0.000000e+00> : vector<8x128xf32>
      %44 = vector.multi_reduction <add>, %43, %cst_14 [0] : vector<2x8x128xf32> to vector<8x128xf32>
      %45 = vector.shape_cast %40 : vector<16x128xf32> to vector<2x8x128xf32>
      %cst_15 = arith.constant dense<0.000000e+00> : vector<8x128xf32>
      %46 = vector.multi_reduction <add>, %45, %cst_15 [0] : vector<2x8x128xf32> to vector<8x128xf32>
      %47 = vector.shape_cast %41 : vector<16x128xf32> to vector<2x8x128xf32>
      %cst_16 = arith.constant dense<0.000000e+00> : vector<8x128xf32>
      %48 = vector.multi_reduction <add>, %47, %cst_16 [0] : vector<2x8x128xf32> to vector<8x128xf32>
      %49 = vector.shape_cast %42 : vector<16x128xf32> to vector<2x8x128xf32>
      %cst_17 = arith.constant dense<0.000000e+00> : vector<8x128xf32>
      %50 = vector.multi_reduction <add>, %49, %cst_17 [0] : vector<2x8x128xf32> to vector<8x128xf32>
      %c0_18 = arith.constant 0 : index
      %c0_19 = arith.constant 0 : index
      %c0_20 = arith.constant 0 : index
      %c0_21 = arith.constant 0 : index
      %51 = vector.load %arg4[%c0_18, %c0_19, %c0_20, %c0_21] : memref<1x4x8x128xf32, #tpu.memory_space<vmem>>, vector<1x1x8x128xf32>
      %52 = vector.shape_cast %51 : vector<1x1x8x128xf32> to vector<8x128xf32>
      %53 = arith.addf %52, %44 : vector<8x128xf32>
      %c0_22 = arith.constant 0 : index
      %c0_23 = arith.constant 0 : index
      %c0_24 = arith.constant 0 : index
      %c0_25 = arith.constant 0 : index
      %54 = vector.load %arg4[%c0_22, %c0_23, %c0_24, %c0_25] : memref<1x4x8x128xf32, #tpu.memory_space<vmem>>, vector<1x1x8x128xf32>
      %55 = vector.shape_cast %54 : vector<1x1x8x128xf32> to vector<8x128xf32>
      %56 = vector.shape_cast %53 : vector<8x128xf32> to vector<1x1x8x128xf32>
      tpu.vector_store %arg4[%c0_22, %c0_23, %c0_24, %c0_25], %56 {strides = array<i32>} : memref<1x4x8x128xf32, #tpu.memory_space<vmem>>, vector<1x1x8x128xf32>,
      %c0_26 = arith.constant 0 : index
      %c1 = arith.constant 1 : index
      %c0_27 = arith.constant 0 : index
      %c0_28 = arith.constant 0 : index
      %57 = vector.load %arg4[%c0_26, %c1, %c0_27, %c0_28] : memref<1x4x8x128xf32, #tpu.memory_space<vmem>>, vector<1x1x8x128xf32>
      %58 = vector.shape_cast %57 : vector<1x1x8x128xf32> to vector<8x128xf32>
      %59 = arith.addf %58, %46 : vector<8x128xf32>
      %c0_29 = arith.constant 0 : index
      %c1_30 = arith.constant 1 : index
      %c0_31 = arith.constant 0 : index
      %c0_32 = arith.constant 0 : index
      %60 = vector.load %arg4[%c0_29, %c1_30, %c0_31, %c0_32] : memref<1x4x8x128xf32, #tpu.memory_space<vmem>>, vector<1x1x8x128xf32>
      %61 = vector.shape_cast %60 : vector<1x1x8x128xf32> to vector<8x128xf32>
      %62 = vector.shape_cast %59 : vector<8x128xf32> to vector<1x1x8x128xf32>
      tpu.vector_store %arg4[%c0_29, %c1_30, %c0_31, %c0_32], %62 {strides = array<i32>} : memref<1x4x8x128xf32, #tpu.memory_space<vmem>>, vector<1x1x8x128xf32>,
      %c0_33 = arith.constant 0 : index
      %c2 = arith.constant 2 : index
      %c0_34 = arith.constant 0 : index
      %c0_35 = arith.constant 0 : index
      %63 = vector.load %arg4[%c0_33, %c2, %c0_34, %c0_35] : memref<1x4x8x128xf32, #tpu.memory_space<vmem>>, vector<1x1x8x128xf32>
      %64 = vector.shape_cast %63 : vector<1x1x8x128xf32> to vector<8x128xf32>
      %65 = arith.addf %64, %48 : vector<8x128xf32>
      %c0_36 = arith.constant 0 : index
      %c2_37 = arith.constant 2 : index
      %c0_38 = arith.constant 0 : index
      %c0_39 = arith.constant 0 : index
      %66 = vector.load %arg4[%c0_36, %c2_37, %c0_38, %c0_39] : memref<1x4x8x128xf32, #tpu.memory_space<vmem>>, vector<1x1x8x128xf32>
      %67 = vector.shape_cast %66 : vector<1x1x8x128xf32> to vector<8x128xf32>
      %68 = vector.shape_cast %65 : vector<8x128xf32> to vector<1x1x8x128xf32>
      tpu.vector_store %arg4[%c0_36, %c2_37, %c0_38, %c0_39], %68 {strides = array<i32>} : memref<1x4x8x128xf32, #tpu.memory_space<vmem>>, vector<1x1x8x128xf32>,
      %c0_40 = arith.constant 0 : index
      %c3 = arith.constant 3 : index
      %c0_41 = arith.constant 0 : index
      %c0_42 = arith.constant 0 : index
      %69 = vector.load %arg4[%c0_40, %c3, %c0_41, %c0_42] : memref<1x4x8x128xf32, #tpu.memory_space<vmem>>, vector<1x1x8x128xf32>
      %70 = vector.shape_cast %69 : vector<1x1x8x128xf32> to vector<8x128xf32>
      %71 = arith.addf %70, %50 : vector<8x128xf32>
      %c0_43 = arith.constant 0 : index
      %c3_44 = arith.constant 3 : index
      %c0_45 = arith.constant 0 : index
      %c0_46 = arith.constant 0 : index
      %72 = vector.load %arg4[%c0_43, %c3_44, %c0_45, %c0_46] : memref<1x4x8x128xf32, #tpu.memory_space<vmem>>, vector<1x1x8x128xf32>
      %73 = vector.shape_cast %72 : vector<1x1x8x128xf32> to vector<8x128xf32>
      %74 = vector.shape_cast %71 : vector<8x128xf32> to vector<1x1x8x128xf32>
      tpu.vector_store %arg4[%c0_43, %c3_44, %c0_45, %c0_46], %74 {strides = array<i32>} : memref<1x4x8x128xf32, #tpu.memory_space<vmem>>, vector<1x1x8x128xf32>,
    } else {
    }
    return
  }
  func.func @transform_0(%arg0: i32, %arg1: i32) -> (i32, i32) {
    %c1_i32 = arith.constant 1 : i32
    %0 = arith.muli %arg0, %c1_i32 : i32
    %1 = arith.addi %0, %arg1 : i32
    %c0_i32 = arith.constant 0 : i32
    %2 = arith.minsi %1, %c0_i32 : i32
    %c0_i32_0 = arith.constant 0 : i32
    %c0_i32_1 = arith.constant 0 : i32
    return %2, %c0_i32_0 : i32, i32
  }
  func.func @transform_1(%arg0: i32, %arg1: i32) -> (i32, i32) {
    %c1_i32 = arith.constant 1 : i32
    %0 = arith.muli %arg0, %c1_i32 : i32
    %1 = arith.addi %0, %arg1 : i32
    %c0_i32 = arith.constant 0 : i32
    %2 = arith.minsi %1, %c0_i32 : i32
    %c0_i32_0 = arith.constant 0 : i32
    %c0_i32_1 = arith.constant 0 : i32
    return %2, %c0_i32_0 : i32, i32
  }
  func.func @transform_2(%arg0: i32, %arg1: i32) -> (i32, i32, i32, i32) {
    %c0_i32 = arith.constant 0 : i32
    %c0_i32_0 = arith.constant 0 : i32
    %c0_i32_1 = arith.constant 0 : i32
    %c0_i32_2 = arith.constant 0 : i32
    return %arg0, %c0_i32, %c0_i32_0, %c0_i32_1 : i32, i32, i32, i32
  }
}

</mosaic_0001>

<bundles_post_ra>
// kernel: tpu_custom_call.1
= control target key start
LH: loop header
LB: loop body
LE: loop exit
PB: predicated region body
PF: predicated region fallthrough
CT: control target
= control target key end

     0   :  { %7 = vsyncpa [#allocation3], 0  ;;  %s406_s0 = inlined_call_operand.hbm [shape: f32[16,128], index: 0, kind: input, shape index: {}]   ;;  %s407_s1 = inlined_call_operand.hbm [shape: f32[16,128], index: 1, kind: input, shape index: {}]   ;;  %s408_s2 = inlined_call_operand.hbm [shape: f32[1,4,8,128], index: 2, kind: output, shape index: {}]  }
   0x1   :  { %8 = vsyncpa [#allocation6], 0 }
   0x2   :  { %9 = vsyncpa [#allocation4], 0  ;;  %s341_s9 = smov [#allocation2]   ;;  %s269_s13 = scalar_lea.hbm %s406_s0, 256 }
   0x3   :  { %s21_s10 = sshll.u32 %s341_s9, 4  ;;  %p270_p0 = scmp.ne.s32.totalorder %s406_s0, %s269_s13  ;;  %s22_s10 = int_to_ptr.vmem [resolvable:$true] %s21_s10 }
   0x4   :  { %p273_p1 = scmp.lt.u32.totalorder %s269_s13, %s406_s0 }
   0x6   :  { %p275_p2 = pnand %p273_p1, %p270_p0 }
   0x8   :  { %278 = shalt.err (!%p275_p2)
}
   0x9   :  { %s279_s18 = scalar_lea.vmem %s22_s10, 256  ;;  %p284_p4 = scmp.lt.s32.totalorder %s22_s10, %s22_s10 }
   0xa   :  { %p280_p3 = scmp.ne.s32.totalorder %s22_s10, %s279_s18  ;;  %p285_p5 = scmp.lt.s32.totalorder %s279_s18, %s279_s18 }
   0xc   :  { %p286_p6 = por %p285_p5, %p284_p4 }
   0xe   :  { %p287_p7 = pnand %p286_p6, %p280_p3 }
  0x10   :  { %290 = shalt.err (!%p287_p7)
}
  0x11   :  { %s342_s19 = smov 128   ;;  %s343_s20 = smov 8  }
  0x12   :  { %27 = dma.hbm_to_vmem [thread:$0]  %s406_s0, 256, %s22_s10, [#allocation3], %s342_s19, %s342_s19, %s343_s20  }
  0x13   :  { %s344_s23 = smov [#allocation5]   ;;  %s291_s27 = scalar_lea.hbm %s407_s1, 256 }
  0x14   :  { %s39_s24 = sshll.u32 %s344_s23, 4  ;;  %p292_p8 = scmp.ne.s32.totalorder %s407_s1, %s291_s27  ;;  %s40_s24 = int_to_ptr.vmem [resolvable:$true] %s39_s24 }
  0x15   :  { %p295_p9 = scmp.lt.u32.totalorder %s291_s27, %s407_s1 }
  0x17   :  { %p297_p10 = pnand %p295_p9, %p292_p8 }
  0x19   :  { %300 = shalt.err (!%p297_p10)
}
  0x1a   :  { %s301_s4 = scalar_lea.vmem %s40_s24, 256  ;;  %p306_p12 = scmp.lt.s32.totalorder %s40_s24, %s40_s24 }
  0x1b   :  { %p302_p11 = scmp.ne.s32.totalorder %s40_s24, %s301_s4  ;;  %p307_p13 = scmp.lt.s32.totalorder %s301_s4, %s301_s4 }
  0x1d   :  { %p308_p0 = por %p307_p13, %p306_p12 }
  0x1f   :  { %p309_p1 = pnand %p308_p0, %p302_p11 }
  0x21   :  { %312 = shalt.err (!%p309_p1)
}
  0x22   :  { %45 = dma.hbm_to_vmem [thread:$0]  %s407_s1, 256, %s40_s24, [#allocation6], %s342_s19, %s342_s19, %s343_s20  }
  0x23   :  { %335 = dma.done.wait [#allocation3], 256  }
  0x24   :  { %336 = vsyncadd [#allocation3], 4294967040 }
  0x25   :  { %337 = dma.done.wait [#allocation6], 256  }
  0x26   :  { %338 = vsyncadd [#allocation6], 4294967040  ;;  %v68_v0 = vld [vmem:[#allocation2] sm:$0xff]  ;;  %v69_v1 = vld [vmem:[#allocation2 + $0x8] sm:$0xff]  ;;  %s345_s1 = smov [#allocation7]  }
  0x27   :  { %v79_v2 = vand.u32 2147483647, %v68_v0  ;;  %v80_v3 = vand.u32 2147483647, %v69_v1  ;;  %v70_v4 = vld [vmem:[#allocation5] sm:$0xff]  ;;  %v71_v5 = vld [vmem:[#allocation5 + $0x8] sm:$0xff] }
  0x28   :  { %v128_v8 = vadd.f32 %v71_v5, %v70_v4  ;;  %v87_v18 = vmax.f32 %v68_v0, 0.0  ;;  %v89_v19 = vmul.f32 %v70_v4, %v68_v0  ;;  %v88_v22 = vmax.f32 %v69_v1, 0.0  ;;  %s234_s6 = sshll.u32 %s345_s1, 4  ;;  %s235_s6 = int_to_ptr.vmem [resolvable:$true] %s234_s6 }
  0x29   :  { %v81_v6 = vsub.f32 0.0, %v79_v2  ;;  %v82_v7 = vsub.f32 0.0, %v80_v3  ;;  %v90_v23 = vmul.f32 %v71_v5, %v69_v1  ;;  %vm117_vm2 = vcmp.ge.f32.partialorder %v68_v0, 0.0  ;;  %s313_s7 = scalar_lea.vmem %s235_s6, 512  ;;  %p318_p3 = scmp.lt.s32.totalorder %s235_s6, %s235_s6 }
  0x2a   :  { %143 = vst [vmem:[#allocation7 + $0x18] sm:$0xff] %v128_v8  ;;  %v91_v27 = vsub.f32 %v87_v18, %v89_v19  ;;  %vm118_vm3 = vcmp.ge.f32.partialorder %v69_v1, 0.0  ;;  %p314_p2 = scmp.ne.s32.totalorder %s235_s6, %s313_s7  ;;  %p319_p4 = scmp.lt.s32.totalorder %s313_s7, %s313_s7 }
  0x2b   :  { %v83_v9 = vmul.f32 1.442695, %v81_v6  ;;  %v85_v10 = vmul.f32 1.442695, %v82_v7  ;;  %v92_v30 = vsub.f32 %v88_v22, %v90_v23 }
  0x2c   :  { %p320_p5 = por %p319_p4, %p318_p3 }
  0x2d   :  { %257 = vpow2.f32 %v83_v9 }
  0x2e   :  { %259 = vpow2.f32 %v85_v10  ;;  %p321_p6 = pnand %p320_p5, %p314_p2 }
  0x37   :  { %v258_v11 = vpop.eup %257 }
  0x38   :  { %v260_v12 = vpop.eup %259  ;;  %v93_v13 = vadd.f32 1.0, %v258_v11  ;;  %v96_v15 = vmul.f32 -0.5, %v258_v11  ;;  %v99_v20 = vand.u32 2147483647, %v258_v11 }
  0x39   :  { %v102_v14 = vadd.f32 1.0, %v260_v12  ;;  %v105_v16 = vmul.f32 -0.5, %v260_v12  ;;  %v108_v24 = vand.u32 2147483647, %v260_v12 }
  0x3a   :  { %261 = vlog2.f32 %v93_v13  ;;  %v97_v17 = vadd.f32 1.0, %v96_v15  ;;  %vm100_vm0 = vcmp.lt.f32.partialorder %v99_v20, 0.0004427343 }
  0x3b   :  { %263 = vlog2.f32 %v102_v14  ;;  %v106_v21 = vadd.f32 1.0, %v105_v16  ;;  %vm109_vm1 = vcmp.lt.f32.partialorder %v108_v24, 0.0004427343 }
  0x3c   :  { %265 = vrcp.f32 %v93_v13  ;;  %v98_v25 = vmul.f32 %v258_v11, %v97_v17 }
  0x3d   :  { %267 = vrcp.f32 %v102_v14  ;;  %v107_v28 = vmul.f32 %v260_v12, %v106_v21 }
  0x44   :  { %v262_v26 = vpop.eup %261 }
  0x45   :  { %v264_v29 = vpop.eup %263  ;;  %v95_v31 = vmul.f32 0.6931472, %v262_v26 }
  0x46   :  { %v266_v32 = vpop.eup %265  ;;  %v104_v33 = vmul.f32 0.6931472, %v264_v29 }
  0x47   :  { %v268_v34 = vpop.eup %267  ;;  %v101_v35 = vsel %vm100_vm0, %v98_v25, %v95_v31  ;;  %v119_v36 = vmul.f32 %v266_v32, %v258_v11 }
  0x48   :  { %v110_v37 = vsel %vm109_vm1, %v107_v28, %v104_v33  ;;  %v111_v38 = vadd.f32 %v101_v35, %v91_v27  ;;  %v120_v39 = vmul.f32 %v268_v34, %v260_v12 }
  0x49   :  { %v112_v40 = vadd.f32 %v110_v37, %v92_v30  ;;  %v121_v41 = vsel %vm117_vm2, %v266_v32, %v119_v36 }
  0x4a   :  { %v122_v42 = vsel %vm118_vm3, %v268_v34, %v120_v39  ;;  %v123_v43 = vmul.f32 %v121_v41, %v70_v4 }
  0x4b   :  { %v125_v44 = vadd.f32 %v112_v40, %v111_v38  ;;  %v124_v45 = vmul.f32 %v122_v42, %v71_v5  ;;  %v127_v46 = vadd.f32 %v122_v42, %v121_v41 }
  0x4d   :  { %v126_v47 = vadd.f32 %v124_v45, %v123_v43  ;;  %131 = vst [vmem:[#allocation7] sm:$0xff] %v125_v44  ;;  %139 = vst [vmem:[#allocation7 + $0x10] sm:$0xff] %v127_v46 }
  0x4f   :  { %135 = vst [vmem:[#allocation7 + $0x8] sm:$0xff] %v126_v47 }
  0x50   :  { %324 = shalt.err (!%p321_p6)
}
  0x51   :  { %s325_s10 = scalar_lea.hbm %s408_s2, 512 }
  0x52   :  { %p326_p7 = scmp.ne.s32.totalorder %s408_s2, %s325_s10  ;;  %p329_p8 = scmp.lt.u32.totalorder %s325_s10, %s408_s2 }
  0x54   :  { %p331_p9 = pnand %p329_p8, %p326_p7 }
  0x56   :  { %334 = shalt.err (!%p331_p9)
}
  0x57   :  { %240 = dma.vmem_to_hbm [thread:$0]  %s235_s6, 512, %s408_s2, [#allocation4], %s342_s19, %s342_s19, %s343_s20  }
  0x58   :  { %339 = dma.done.wait [#allocation4], 512  }
  0x59   :  { %340 = vsyncadd [#allocation4], 4294966784 }
  0x5a   :  { %244 = vsyncpa [#allocation3], 1 }
  0x5b   :  { %245 = vsyncpa [#allocation6], 1 }
  0x5c   :  { %246 = vsyncpa [#allocation4], 1 }

</bundles_post_ra>
